<compile_context>
chip_gen: v5e
topology: v5e:2x2
jax: 0.10.0
libtpu: 0.0.40
codegen_flags: <defaults>
</compile_context>

<pallas_src>
import functools

import jax
import jax.numpy as jnp
from jax import lax
from jax.experimental import pallas as pl
from jax.experimental.pallas import tpu as pltpu


def _ce_partial_kernel(logits_ref, target_ref, out_ref, *, n_rows: int):
    # logits_ref: (TILE_N, C) in native dtype (bf16/f32), target_ref: (TILE_N, 1) i32
    # out_ref:    (1, 1, 128) f32; lane 0 = partial loss sum, lane 1 = valid count
    tn, c = logits_ref.shape

    # Ragged-tail mask: the grid may overrun the unpadded array; OOB rows of
    # the VMEM block contain stale data and must not contribute.
    row = lax.broadcasted_iota(jnp.int32, (tn, 1), 0)
    row_valid = (pl.program_id(0) * tn + row) < n_rows

    tgt = target_ref[...].astype(jnp.int32)                       # (TILE_N, 1)
    valid = row_valid & (tgt >= 0) & (tgt < c)                    # (TILE_N, 1)

    # Pass 1: row max in native dtype (exact), upcast only the (TILE_N, 1) result.
    m = jnp.max(logits_ref[...], axis=-1, keepdims=True).astype(jnp.float32)

    # Pass 2: numerically stable exp-sum in f32 (upcast inside the consumer;
    # no stored (TILE_N, C) f32 temp is bound and reused across passes).
    ex = jnp.exp(logits_ref[...].astype(jnp.float32) - m)
    lse = m + jnp.log(jnp.sum(ex, axis=-1, keepdims=True))        # (TILE_N, 1)

    # Pass 3: gather target logit via masked select (no 0 * -inf NaN).
    col = lax.broadcasted_iota(jnp.int32, (tn, c), 1)
    hit = col == tgt
    picked = jnp.sum(
        jnp.where(hit, logits_ref[...].astype(jnp.float32), 0.0),
        axis=-1, keepdims=True)                                    # (TILE_N, 1)

    per_example = jnp.where(valid, lse - picked, 0.0)              # (TILE_N, 1)
    loss_sum = jnp.sum(per_example)
    cnt = jnp.sum(valid.astype(jnp.float32))

    # Small lane-dense partial row: lane 0 = loss sum, lane 1 = count.
    lane = lax.broadcasted_iota(jnp.int32, (1, 1, 128), 2)
    out_ref[...] = jnp.where(lane == 0, loss_sum,
                             jnp.where(lane == 1, cnt, 0.0))


def _pick_tile_n(n: int, c: int, itemsize: int, vmem_cap: int) -> int:
    """Rows per grid step (multiple of 8).

    Budget model per row: 2x double-buffered native-dtype input row plus
    ~3 rows of f32 temporaries (exp / pick passes).  Total kept under
    min(48 MiB, 60% of VMEM) so it also fits v7x (64 MiB per TensorCore).
    """
    budget = min(48 * 1024 * 1024, int(vmem_cap * 0.6))
    per_row = 2 * c * itemsize + 3 * c * 4 + 8
    rows_budget = max(8, (budget - (2 << 20)) // max(1, per_row) // 8 * 8)
    # Target ~4 MiB of native-dtype logits per step (per-step overhead ~0.35us
    # becomes negligible vs DMA time at this size on v5e/v6e/v7x).
    rows_4mib = max(8, (4 * 1024 * 1024) // max(1, c * itemsize) // 8 * 8)
    rows = min(rows_budget, rows_4mib, 2048)
    # Never request more rows than the (8-padded) batch.
    rows = min(rows, -(-n // 8) * 8)
    # Megacore: keep >= 2 grid tiles whenever there is more than one sublane
    # group of work so both v7x TensorCores get a share ("parallel" axis).
    if n > 8:
        half = -(-n // 2)
        half8 = -(-half // 8) * 8
        rows = min(rows, half8)
    return max(8, int(rows))


def cross_entropy_loss(y_pred: jax.Array, target: jax.Array) -> jax.Array:
    """Mean cross-entropy over the batch, matching nn.CrossEntropyLoss()."""
    assert y_pred.ndim == 2, "y_pred must be (N, C)"
    n, c = y_pred.shape
    itemsize = jnp.dtype(y_pred.dtype).itemsize

    try:
        info = pltpu.get_tpu_info()
        vmem_cap = int(getattr(info, "vmem_capacity_bytes", 64 * 1024 * 1024))
    except Exception:  # be conservative (v7x-sized VMEM) if the query fails
        vmem_cap = 64 * 1024 * 1024

    tile_n = _pick_tile_n(n, c, itemsize, vmem_cap)
    num_tiles = pl.cdiv(n, tile_n)

    tgt = target.astype(jnp.int32).reshape(n, 1)

    # VMEM budget: double-buffered native-dtype logits tile + f32 temporaries
    # for the exp / pick passes + targets/partials + slack.  Always >= actual
    # need; stays well under 64 MiB on v7x by construction of tile_n.
    need = (2 * tile_n * c * itemsize      # double-buffered input tile
            + 3 * tile_n * c * 4           # f32 intermediates (exp, pick)
            + 4 * tile_n * 4               # targets + per-row columns
            + (2 << 20))                   # slack / compiler internal scratch
    vmem_limit = int(max(32 * 1024 * 1024, need + (4 << 20)))

    kernel = functools.partial(_ce_partial_kernel, n_rows=n)
    partials = pl.pallas_call(
        kernel,
        out_shape=jax.ShapeDtypeStruct((num_tiles, 1, 128), jnp.float32),
        grid=(num_tiles,),
        in_specs=[
            pl.BlockSpec((tile_n, c), lambda i: (i, 0)),   # logits row tile
            pl.BlockSpec((tile_n, 1), lambda i: (i, 0)),   # target row tile
        ],
        out_specs=pl.BlockSpec((1, 1, 128), lambda i: (i, 0, 0)),
        compiler_params=pltpu.CompilerParams(
            dimension_semantics=("parallel",),
            vmem_limit_bytes=vmem_limit,
        ),
    )(y_pred, tgt)

    total = jnp.sum(partials[:, 0, 0])
    count = jnp.sum(partials[:, 0, 1])
    # NOTE: count == 0 (all targets ignored) yields NaN, same as PyTorch.
    return total / count


if __name__ == "__main__":
    key = jax.random.PRNGKey(0)
    k1, k2, k3, k4 = jax.random.split(key, 4)

    # Test 1 (f32): N not a multiple of 8 and C not a multiple of 128 to
    # exercise the in-kernel ragged-row mask and the lane-padding path.
    N, C = 10, 48
    y_pred = jax.random.normal(k1, (N, C), dtype=jnp.float32)
    target = jax.random.randint(k2, (N,), 0, C, dtype=jnp.int32)

    loss = cross_entropy_loss(y_pred, target)
    jax.block_until_ready(loss)

    lse = jax.scipy.special.logsumexp(y_pred, axis=-1)
    ref = jnp.mean(lse - y_pred[jnp.arange(N), target])
    assert jnp.allclose(loss, ref, atol=1e-5, rtol=1e-5), (loss, ref)

    # Test 2 (bf16): larger batch, C just below a multiple of 128, ragged
    # last tile -- checks the no-pad path and bf16 upcast-in-consumer math.
    N2, C2 = 300, 1000
    y2 = jax.random.normal(k3, (N2, C2), dtype=jnp.float32).astype(jnp.bfloat16)
    t2 = jax.random.randint(k4, (N2,), 0, C2, dtype=jnp.int32)

    loss2 = cross_entropy_loss(y2, t2)
    jax.block_until_ready(loss2)

    x2 = y2.astype(jnp.float32)
    lse2 = jax.scipy.special.logsumexp(x2, axis=-1)
    ref2 = jnp.mean(lse2 - x2[jnp.arange(N2), t2])
    assert jnp.allclose(loss2, ref2, atol=2e-3, rtol=2e-3), (loss2, ref2)

    print("KERNEL_OK")
</pallas_src>

<mosaic_0001>
module attributes {stable_mosaic.version = 11 : i64} {
  func.func @_ce_partial_kernel(%arg0: i32, %arg1: memref<8x48xf32, #tpu.memory_space<vmem>>, %arg2: memref<8x1xi32, #tpu.memory_space<vmem>>, %arg3: memref<1x1x128xf32, #tpu.memory_space<vmem>>) attributes {dimension_semantics = [#tpu.dimension_semantics<parallel>], iteration_bounds = array<i64: 2>, scalar_prefetch = 0 : i64, scratch_operands = 0 : i64, tpu.core_type = #tpu.core_type<tc>, window_params = [{transform_indices = @transform_0, window_bounds = array<i64: 8, 48>}, {transform_indices = @transform_1, window_bounds = array<i64: 8, 1>}, {transform_indices = @transform_2, window_bounds = array<i64: 1, 1, 128>}]} {
    %0 = tpu.iota {dimensions = array<i32: 0>} : vector<8x1xi32>
    %c8_i32 = arith.constant 8 : i32
    %1 = arith.muli %arg0, %c8_i32 : i32
    %2 = vector.broadcast %1 : i32 to vector<8x1xi32>
    %3 = arith.addi %2, %0 : vector<8x1xi32>
    %c10_i32 = arith.constant 10 : i32
    %4 = vector.broadcast %c10_i32 : i32 to vector<8x1xi32>
    %5 = arith.cmpi slt, %3, %4 : vector<8x1xi32>
    %c0 = arith.constant 0 : index
    %c0_0 = arith.constant 0 : index
    %6 = vector.load %arg2[%c0, %c0_0] : memref<8x1xi32, #tpu.memory_space<vmem>>, vector<8x1xi32>
    %c0_i32 = arith.constant 0 : i32
    %7 = vector.broadcast %c0_i32 : i32 to vector<8x1xi32>
    %8 = arith.cmpi sge, %6, %7 : vector<8x1xi32>
    %9 = arith.andi %5, %8 : vector<8x1xi1>
    %c48_i32 = arith.constant 48 : i32
    %10 = vector.broadcast %c48_i32 : i32 to vector<8x1xi32>
    %11 = arith.cmpi slt, %6, %10 : vector<8x1xi32>
    %12 = arith.andi %9, %11 : vector<8x1xi1>
    %c0_1 = arith.constant 0 : index
    %c0_2 = arith.constant 0 : index
    %13 = vector.load %arg1[%c0_1, %c0_2] : memref<8x48xf32, #tpu.memory_space<vmem>>, vector<8x48xf32>
    %cst = arith.constant dense<0xFF800000> : vector<8xf32>
    %14 = vector.multi_reduction <maximumf>, %13, %cst [1] : vector<8x48xf32> to vector<8xf32>
    %15 = vector.shape_cast %14 : vector<8xf32> to vector<8x1xf32>
    %c0_3 = arith.constant 0 : index
    %c0_4 = arith.constant 0 : index
    %16 = vector.load %arg1[%c0_3, %c0_4] : memref<8x48xf32, #tpu.memory_space<vmem>>, vector<8x48xf32>
    %17 = vector.broadcast %15 : vector<8x1xf32> to vector<8x48xf32>
    %18 = arith.subf %16, %17 : vector<8x48xf32>
    %19 = math.exp %18 : vector<8x48xf32>
    %cst_5 = arith.constant dense<0.000000e+00> : vector<8xf32>
    %20 = vector.multi_reduction <add>, %19, %cst_5 [1] : vector<8x48xf32> to vector<8xf32>
    %21 = vector.shape_cast %20 : vector<8xf32> to vector<8x1xf32>
    %22 = math.log %21 : vector<8x1xf32>
    %23 = arith.addf %15, %22 : vector<8x1xf32>
    %24 = tpu.iota {dimensions = array<i32: 1>} : vector<8x48xi32>
    %25 = vector.broadcast %6 : vector<8x1xi32> to vector<8x48xi32>
    %26 = arith.cmpi eq, %24, %25 : vector<8x48xi32>
    %c0_6 = arith.constant 0 : index
    %c0_7 = arith.constant 0 : index
    %27 = vector.load %arg1[%c0_6, %c0_7] : memref<8x48xf32, #tpu.memory_space<vmem>>, vector<8x48xf32>
    %cst_8 = arith.constant 0.000000e+00 : f32
    %28 = vector.broadcast %cst_8 : f32 to vector<8x48xf32>
    %29 = arith.select %26, %27, %28 : vector<8x48xi1>, vector<8x48xf32>
    %cst_9 = arith.constant dense<0.000000e+00> : vector<8xf32>
    %30 = vector.multi_reduction <add>, %29, %cst_9 [1] : vector<8x48xf32> to vector<8xf32>
    %31 = vector.shape_cast %30 : vector<8xf32> to vector<8x1xf32>
    %32 = arith.subf %23, %31 : vector<8x1xf32>
    %cst_10 = arith.constant 0.000000e+00 : f32
    %33 = vector.broadcast %cst_10 : f32 to vector<8x1xf32>
    %34 = arith.select %12, %32, %33 : vector<8x1xi1>, vector<8x1xf32>
    %35 = vector.shape_cast %34 : vector<8x1xf32> to vector<1x8x1xf32>
    %cst_11 = arith.constant dense<0.000000e+00> : vector<1xf32>
    %36 = vector.multi_reduction <add>, %35, %cst_11 [1, 2] : vector<1x8x1xf32> to vector<1xf32>
    %37 = vector.shape_cast %36 : vector<1xf32> to vector<1x1x1xf32>
    %38 = vector.extract %37[0, 0, 0] : f32 from vector<1x1x1xf32>
    %39 = arith.extui %12 : vector<8x1xi1> to vector<8x1xi32>
    %40 = arith.sitofp %39 : vector<8x1xi32> to vector<8x1xf32>
    %41 = vector.shape_cast %40 : vector<8x1xf32> to vector<1x8x1xf32>
    %cst_12 = arith.constant dense<0.000000e+00> : vector<1xf32>
    %42 = vector.multi_reduction <add>, %41, %cst_12 [1, 2] : vector<1x8x1xf32> to vector<1xf32>
    %43 = vector.shape_cast %42 : vector<1xf32> to vector<1x1x1xf32>
    %44 = vector.extract %43[0, 0, 0] : f32 from vector<1x1x1xf32>
    %45 = tpu.iota {dimensions = array<i32: 2>} : vector<1x1x128xi32>
    %c0_i32_13 = arith.constant 0 : i32
    %46 = vector.broadcast %c0_i32_13 : i32 to vector<1x1x128xi32>
    %47 = arith.cmpi eq, %45, %46 : vector<1x1x128xi32>
    %c1_i32 = arith.constant 1 : i32
    %48 = vector.broadcast %c1_i32 : i32 to vector<1x1x128xi32>
    %49 = arith.cmpi eq, %45, %48 : vector<1x1x128xi32>
    %cst_14 = arith.constant 0.000000e+00 : f32
    %50 = vector.broadcast %44 : f32 to vector<1x1x128xf32>
    %51 = vector.broadcast %cst_14 : f32 to vector<1x1x128xf32>
    %52 = arith.select %49, %50, %51 : vector<1x1x128xi1>, vector<1x1x128xf32>
    %53 = vector.broadcast %38 : f32 to vector<1x1x128xf32>
    %54 = arith.select %47, %53, %52 : vector<1x1x128xi1>, vector<1x1x128xf32>
    %c0_15 = arith.constant 0 : index
    %c0_16 = arith.constant 0 : index
    %c0_17 = arith.constant 0 : index
    %55 = vector.load %arg3[%c0_15, %c0_16, %c0_17] : memref<1x1x128xf32, #tpu.memory_space<vmem>>, vector<1x1x128xf32>
    tpu.vector_store %arg3[%c0_15, %c0_16, %c0_17], %54 {strides = array<i32>} : memref<1x1x128xf32, #tpu.memory_space<vmem>>, vector<1x1x128xf32>,
    return
  }
  func.func @transform_0(%arg0: i32) -> (i32, i32) {
    %c0_i32 = arith.constant 0 : i32
    %c0_i32_0 = arith.constant 0 : i32
    return %arg0, %c0_i32 : i32, i32
  }
  func.func @transform_1(%arg0: i32) -> (i32, i32) {
    %c0_i32 = arith.constant 0 : i32
    %c0_i32_0 = arith.constant 0 : i32
    return %arg0, %c0_i32 : i32, i32
  }
  func.func @transform_2(%arg0: i32) -> (i32, i32, i32) {
    %c0_i32 = arith.constant 0 : i32
    %c0_i32_0 = arith.constant 0 : i32
    %c0_i32_1 = arith.constant 0 : i32
    return %arg0, %c0_i32, %c0_i32_0 : i32, i32, i32
  }
}

</mosaic_0001>

<bundles_post_ra>
// kernel: tpu_custom_call.1
= control target key start
LH: loop header
LB: loop body
LE: loop exit
PB: predicated region body
PF: predicated region fallthrough
CT: control target
= control target key end

     0   :  { %7 = vsyncpa [#allocation3], 0  ;;  %s535_s0 = inlined_call_operand.vmem [shape: f32[10,48], index: 0, kind: input, shape index: {}]   ;;  %s536_s1 = inlined_call_operand.vmem [shape: s32[10,1], index: 1, kind: input, shape index: {}]   ;;  %s537_s2 = inlined_call_operand.hbm [shape: f32[2,1,128], index: 2, kind: output, shape index: {}]  }
   0x1   :  { %9 = vsyncpa [#allocation3 + $0x1], 0  ;;  %s443_s9 = smov 0   ;;  %s445_s10 = smov 0  }
   0x2   :  { %s447_s11 = smov 0   ;;  %s449_s12 = smov 0  }
   0x3 LB: > { %s464_s13 = sadd.s32 4294967295, %s424_s12   ;;  %s302_s14 = sadd.s32 4294967294, %s424_s12   ;;  %s424_s12 = sphi %s449_s12, %s543_s12   ;;  %s420_s11 = sphi %s447_s11, %s542_s11   ;;  %s416_s10 = sphi %s445_s10, %s541_s10   ;;  %s412_s9 = sphi %s443_s9, %s540_s9  }
   0x4   : > { %s468_s15 = sadd.s32 1, %s424_s12   ;;  %s74_s16 = sadd.s32 1, %s420_s11 }
   0x5   : > { %s71_s17 = ssub.s32 %s424_s12, %s468_s15  ;;  %p84_p0 = scmp.ne.s32.totalorder %s420_s11, %s416_s10 }
   0x6   : > { %p72_p1 = scmp.eq.s32.totalorder %s71_s17, 0  ;;  %p85_p2 = scmp.eq.s32.totalorder %s464_s13, 1 }
   0x7   : > { %p90_p3 = scmp.ne.s32.totalorder %s416_s10, %s412_s9  ;;  %p91_p4 = scmp.eq.s32.totalorder %s302_s14, 1 }
   0x8   : > { %s479_s18 = scalar_select %p72_p1, %s420_s11, %s74_s16  }
   0x9   : > { %p481_p5 = por %p85_p2, %p84_p0  ;;  %p485_p6 = por %p91_p4, %p90_p3 }
   0xa   : > { %p305_p7 = scmp.ge.s32.totalorder %s424_s12, 1  ;;  %p123_p8 = scmp.lt.s32.totalorder %s424_s12, 3 }
   0xc   : > { %p124_p9 = pnand %p305_p7, %p123_p8 }
   0xd   : > { %p147_p10 = scmp.lt.s32.totalorder (!%p124_p9), %s464_s13, 1  ;;  %s308_s29 = sshll.u32 (!%p124_p9), %s464_s13, 3 }
   0xe   : > { %127 = sbr.rel (%p124_p9) target bundleno = 476 (0x1dc), region = 28  ;;  %s145_s30 = sand.u32 (!%p124_p9), 1, %s416_s10  }
   0xf   : > { %s231_s5 = scalar_lea.hbm (!%p124_p9), %s537_s2, %s464_s13  ;;  %s146_s6 = scalar_lea.vmem (!%p124_p9), [#allocation2], %s145_s30 }
  0x10   : > { %s233_s7 = sshll.u32 (!%p124_p9), %s146_s6, 4  ;;  %s235_s14 = sshll.u32 (!%p124_p9), %s231_s5, 4  ;;  %s234_s7 = int_to_ptr.vmem [resolvable:$true] %s233_s7  ;;  %s236_s14 = int_to_ptr.hbm [resolvable:$true] %s235_s14 }
  0x11   : > { %s223_s17 = scalar_lea.sflag (!%p124_p9), [#allocation3], %s145_s30  ;;  %s382_s24 = scalar_lea.hbm (!%p124_p9), %s537_s2, 2 }
  0x13   : > { %v426_v0 = vmov 0   ;;  %s148_s21 = scalar_select %p147_p10, %s464_s13, 1  ;;  %vm167_vm0 = vcmask 392192   ;;  %v155_v9 = vlaneseq  ;;  %v158_v15 = vstv %s308_s29 }
  0x14   : > { %357 = vset.pattern.permute.xlu0 %v426_v0  ;;  %vm192_vm7 = vcmask 7168   ;;  %v427_v25 = vmov 0.0  }
  0x15   : > { %s306_s22 = sshll.u32 %s148_s21, 3  ;;  %v181_v10 = vand.u32 127, %v155_v9  ;;  %v156_v14 = vshrl.u32 %v155_v9, 7  ;;  %s376_s21 = sshra.s32 %s236_s14, 4  ;;  %s377_s21 = int_to_ptr.hbm [resolvable:$true] %s376_s21 }
  0x16   : > { %s150_s25 = scalar_lea.vmem %s535_s0, %s306_s22  ;;  %s154_s28 = scalar_lea.vmem %s536_s1, %s306_s22 }
  0x17   : > { %v166_v1 = vld [vmem:[%s150_s25] sm:$0xff]  ;;  %v159_v17 = vadd.s32 %v158_v15, %v156_v14  ;;  %vm216_vm8 = vcmp.eq.s32.totalorder %v181_v10, 1  ;;  %vm215_vm9 = vcmp.eq.s32.totalorder %v181_v10, 0  ;;  %s378_s22 = scalar_lea.hbm %s377_s21, 1  ;;  %p383_p0 = scmp.lt.s32.totalorder %s377_s21, %s537_s2 }
  0x18   : > { %v168_v2 = vsel %vm167_vm0, %v166_v1, -inf  ;;  %v161_v3 = vld [vmem:[%s154_s28] sm:$0xff]  ;;  %p379_p11 = scmp.ne.s32.totalorder %s377_s21, %s378_s22  ;;  %p384_p1 = scmp.lt.s32.totalorder %s382_s24, %s378_s22 }
  0x19   : > { %169 = vmax.xlane.f32.xlu0 %v168_v2  ;;  %vm160_vm2 = vcmp.lt.s32.totalorder %v159_v17, 10  ;;  %vm162_vm3 = vcmp.ge.s32.totalorder %v161_v3, 0  ;;  %vm164_vm5 = vcmp.lt.s32.totalorder %v161_v3, 48 }
  0x1a   : > { %vm163_vm4 = vmand %vm160_vm2, %vm162_vm3  ;;  %p380_p12 = pnand %p379_p11, %p481_p5  ;;  %p385_p2 = por %p384_p1, %p383_p0 }
  0x1b   : > { %vm165_vm6 = vmand %vm163_vm4, %vm164_vm5 }
  0x1c   : > { %v309_v26 = vsel %vm165_vm6, 1.0, %v427_v25  ;;  %p381_p13 = pneg %p380_p12 }
  0x1d   : > { %v205_v27 = vsel %vm192_vm7, %v309_v26, 0.0 }
  0x1e   : > { %p386_p3 = pnand %p385_p2, %p381_p13 }
  0x2d   : > { %183 = vperm.xlu0 %357, %v161_v3  }
  0x8c   : > { %v170_v4 = vpop.xlane.xlu0 %169 }
  0x8d   : > { %v171_v5 = vsub.f32 %v166_v1, %v170_v4 }
  0x8f   : > { %v172_v6 = vmul.f32 1.442695, %v171_v5 }
  0x91   : > { %358 = vpow2.f32 %v172_v6 }
  0x97   : > { %v359_v7 = vpop.eup %358 }
  0x98   : > { %v174_v8 = vsel %vm167_vm0, %v359_v7, 0.0 }
  0x99   : > { %175 = vadd.xlane.f32.xlu1 %v174_v8 }
  0x9f   : > { %v184_v11 = vpop.permute.xlu0 %183 }
  0xa0   : > { %vm185_vm1 = vcmp.eq.s32.totalorder %v181_v10, %v184_v11 }
  0xa1   : > { %v186_v12 = vsel %vm185_vm1, %v166_v1, 0.0 }
  0xa2   : > { %v187_v13 = vsel %vm167_vm0, %v186_v12, 0.0 }
  0xa3   : > { %188 = vadd.xlane.f32.xlu1 %v187_v13 }
 0x10c   : > { %v176_v16 = vpop.xlane.xlu1 %175 }
 0x10d   : > { %360 = vlog2.f32 %v176_v16 }
 0x113   : > { %v361_v18 = vpop.eup %360 }
 0x114   : > { %v178_v19 = vmul.f32 0.6931472, %v361_v18 }
 0x116   : > { %v179_v20 = vadd.f32 %v178_v19, %v170_v4  ;;  %v189_v21 = vpop.xlane.xlu1 %188 }
 0x118   : > { %v190_v22 = vsub.f32 %v179_v20, %v189_v21 }
 0x11a   : > { %v191_v23 = vsel %vm165_vm6, %v190_v22, 0.0 }
 0x11b   : > { %v193_v24 = vsel %vm192_vm7, %v191_v23, 0.0 }
 0x11c   : > { %194 = vadd.xlane.f32.xlu2 %v193_v24 }
 0x124   : > { %206 = vadd.xlane.f32.xlu2 %v205_v27 }
 0x18f   : > { %v195_v28 = vpop.xlane.xlu2 %194 }
 0x190   : > { %v196_v29 = vrot.slane %v195_v28, 4 }
 0x192   : > { %v197_v30 = vadd.f32 %v196_v29, %v195_v28 }
 0x194   : > { %v198_v31 = vrot.slane %v197_v30, 2 }
 0x196   : > { %v199_v32 = vadd.f32 %v198_v31, %v197_v30 }
 0x197   : > { %v207_v33 = vpop.xlane.xlu2 %206 }
 0x198   : > { %v208_v34 = vrot.slane %v207_v33, 4  ;;  %v200_v35 = vrot.slane %v199_v32, 1 }
 0x19a   : > { %v209_v36 = vadd.f32 %v208_v34, %v207_v33  ;;  %v201_v37 = vadd.f32 %v200_v35, %v199_v32 }
 0x19c   : > { %v210_v38 = vrot.slane %v209_v36, 2  ;;  %312 = vpush %v201_v37 }
 0x19e   : > { %v211_v39 = vadd.f32 %v210_v38, %v209_v36 }
 0x1a0   : > { %v212_v40 = vrot.slane %v211_v39, 1 }
 0x1a2   : > { %v213_v41 = vadd.f32 %v212_v40, %v211_v39 }
 0x1a4   : > { %314 = vpush %v213_v41 }
 0x1cd   : > { %s313_s8 = spop %312 }
 0x1ce   : > { %v219_v43 = vstv %s313_s8 }
 0x1d5   : > { %s315_s16 = spop %314 }
 0x1d6   : > { %v217_v42 = vstv %s315_s16 }
 0x1d7   : > { %v218_v44 = vsel %vm216_vm8, %v217_v42, 0.0 }
 0x1d8   : > { %v220_v45 = vsel %vm215_vm9, %v219_v43, %v218_v44 }
 0x1d9   : > { %221 = vst [vmem:[%s146_s6] sm:$0x1] %v220_v45 }
 0x1da   : > { %389 = shalt.err (!%p386_p3)
}
 0x1db   : > { %316 = dma.vmem_to_hbm [thread:$0]  (%p481_p5), %s234_s7, 16, %s236_s14, %s223_s17  }
 0x1dc PF: > { %p322_p4 = scmp.ge.s32.totalorder %s424_s12, 2  ;;  %s247_s27 = sand.u32 1, %s412_s9  }
 0x1dd   : > { %s248_s28 = scalar_lea.sflag [#allocation3], %s247_s27 }
 0x1de   : > { %p319_p7 = pnand %p322_p4, %p485_p6 }
 0x1e0   : > { %p320_p8 = pneg %p319_p7 }
 0x1e2   : > { %407 = dma.done.wait (%p320_p8), %s248_s28, 16  }
 0x1e3   : > { %409 = vsyncadd (%p320_p8), %s248_s28, 4294967280  ;;  %p12_p9 = scmp.ge.s32.totalorder %s468_s15, 4   ;;  %s540_s9 = smov %s416_s10 }
 0x1e4   : > { %s541_s10 = smov %s420_s11  ;;  %s542_s11 = smov %s479_s18 }
 0x1e5   : > { %s543_s12 = smov %s468_s15  ;;  %14 = sbr.rel (!%p12_p9) target bundleno = 3 (0x3), region = 66 }
 0x1ea   :  { %253 = vsyncpa [#allocation3], 1 }
 0x1eb   :  { %255 = vsyncpa [#allocation3 + $0x1], 1 }

</bundles_post_ra>
